<compile_context>
chip_gen: v6e
topology: v6e:2x2x1
jax: 0.10.0
libtpu: 0.0.40
codegen_flags: <defaults>
</compile_context>

<pallas_src>
import jax
import jax.numpy as jnp
from jax.experimental import pallas as pl
from jax.experimental.pallas import tpu as pltpu

_MIB = 1024 * 1024


def _round_up(x, m):
    return ((x + m - 1) // m) * m


def _tpu_vmem_and_cores():
    """Best-effort (VMEM capacity bytes, TensorCores per device). Never raises."""
    cap, cores = None, 1
    try:
        info = pltpu.get_tpu_info()
        for name in ("vmem_capacity_bytes", "vmem_bytes", "vmem_size_bytes"):
            v = getattr(info, name, None)
            if v:
                cap = int(v)
                break
        for name in ("num_tensorcores", "tensorcore_count", "num_cores",
                     "core_count", "cores_per_chip"):
            v = getattr(info, name, None)
            if isinstance(v, int) and not isinstance(v, bool) and v > 1:
                cores = max(1, min(int(v), 8))
                break
    except Exception:
        pass
    if not cap:
        cap = 64 * _MIB  # conservative: v7x per-core VMEM; v5e/v6e have 128 MiB
    return cap, cores


def _pe_add_3d_kernel(x_ref, pe_ref, o_ref):
    # x: (ts, B, td); pe: (ts, 1, td) -> sublane broadcast over the batch axis.
    o_ref[...] = x_ref[...] + pe_ref[...]


def _pe_add_slab_kernel(x_ref, pe_ref, o_ref):
    # x/o: (ts, B*D) lane-dense slabs; pe: (ts, D).
    # Static, lane-aligned per-batch slice adds (D % 128 == 0 in this path).
    d = pe_ref.shape[-1]
    nb = x_ref.shape[-1] // d
    pe = pe_ref[...]
    for b in range(nb):
        sl = slice(b * d, (b + 1) * d)
        o_ref[:, sl] = x_ref[:, sl] + pe


def positional_encoding(x, pos_enc, *, vmem_budget_bytes=None,
                        target_tile_bytes=None):
    """x: (S, B, D); pos_enc: (max_len, 1, D) with S <= max_len.

    Returns x + pos_enc[:S] (dropout p=0.0 is the identity).
    `vmem_budget_bytes` / `target_tile_bytes` override tile-size selection
    (used by the self-test to exercise the wide-row guard).
    """
    S, B, D = x.shape
    max_len, one, D_pe = pos_enc.shape
    assert one == 1 and D_pe == D, "pos_enc must have shape (max_len, 1, dim_emb)"
    assert S <= max_len, "seq_len must be <= max_len"
    pos_enc = pos_enc.astype(x.dtype)
    item = x.dtype.itemsize

    # ---- generation-aware VMEM limit / tile targets --------------------------
    vmem_cap, n_cores = _tpu_vmem_and_cores()
    vmem_limit = min(vmem_cap * 3 // 4, 96 * _MIB)      # ~48 MiB v7x, ~96 MiB v5e/v6e
    if target_tile_bytes is None:
        target_tile_bytes = 8 * _MIB if vmem_cap <= 64 * _MIB else 16 * _MIB
    budget = (vmem_budget_bytes if vmem_budget_bytes is not None
              else vmem_limit - 4 * _MIB)               # headroom for DMA/compiler scratch
    budget = max(budget, _MIB)

    def seq_tile(per_step_vmem, x_step_bytes, multiple):
        # Largest sequence-step tile that meets the DMA-size target and fits
        # the double-buffered VMEM budget; optionally rounded to `multiple`
        # (sublane constraint of the 2D slab path) and balanced across cores.
        ts = min(S,
                 max(1, target_tile_bytes // max(1, x_step_bytes)),
                 max(1, budget // max(1, per_step_vmem)))
        if multiple > 1 and ts < S:
            ts = (ts // multiple) * multiple
            if ts == 0:
                return 0
        if n_cores > 1:  # v7x: make the block count a multiple of the TC count
            nb = _round_up(pl.cdiv(S, ts), n_cores)
            ts_bal = pl.cdiv(S, nb)
            if multiple > 1:
                ts_bal = _round_up(ts_bal, multiple)
            ts = min(ts, max(ts_bal, 1))   # only ever shrink -> stays in budget
        return ts

    # ---- lane-dense slab path for small batches -------------------------------
    if B < 8 and D % 128 == 0:
        per_step = (4 * B * D + 2 * D) * item           # 2x in + 2x out + 2x pe
        ts = seq_tile(per_step, B * D * item, multiple=8)
        if ts > 0:
            grid = (pl.cdiv(S, ts),)
            out2 = pl.pallas_call(
                _pe_add_slab_kernel,
                out_shape=jax.ShapeDtypeStruct((S, B * D), x.dtype),
                grid_spec=pltpu.PrefetchScalarGridSpec(
                    num_scalar_prefetch=0,
                    grid=grid,
                    in_specs=[
                        pl.BlockSpec((ts, B * D), lambda s: (s, 0)),
                        pl.BlockSpec((ts, D), lambda s: (s, 0)),
                    ],
                    out_specs=pl.BlockSpec((ts, B * D), lambda s: (s, 0)),
                ),
                compiler_params=pltpu.CompilerParams(
                    dimension_semantics=("parallel",),
                    vmem_limit_bytes=vmem_limit,
                ),
            )(x.reshape(S, B * D), pos_enc.reshape(max_len, D))
            return out2.reshape(S, B, D)

    # ---- general 3D path ------------------------------------------------------
    Bp = _round_up(B, 8)                                # sublane padding of (B, D) tiles
    Dp = _round_up(D, 128)                              # lane padding
    td = D
    per_step = (4 * Bp * Dp + 2 * 8 * Dp) * item        # x in/out (padded) + pe (1->8 padded)
    if per_step > budget and D % 128 == 0 and D > 128:
        # Wide-row guard: a single sequence step over-fills VMEM -> tile dim_emb.
        td_units = max(1, budget // ((4 * Bp + 16) * 128 * item))
        td = min(D, td_units * 128)
        per_step = (4 * Bp + 16) * td * item
    ts = max(1, seq_tile(per_step, B * td * item, multiple=1))
    grid = (pl.cdiv(S, ts), pl.cdiv(D, td))

    return pl.pallas_call(
        _pe_add_3d_kernel,
        out_shape=jax.ShapeDtypeStruct((S, B, D), x.dtype),
        grid_spec=pltpu.PrefetchScalarGridSpec(
            num_scalar_prefetch=0,
            grid=grid,
            in_specs=[
                pl.BlockSpec((ts, B, td), lambda s, d: (s, 0, d)),
                pl.BlockSpec((ts, 1, td), lambda s, d: (s, 0, d)),
            ],
            out_specs=pl.BlockSpec((ts, B, td), lambda s, d: (s, 0, d)),
        ),
        compiler_params=pltpu.CompilerParams(
            dimension_semantics=("parallel", "parallel"),
            vmem_limit_bytes=vmem_limit,
        ),
    )(x, pos_enc)


if __name__ == "__main__":
    key = jax.random.PRNGKey(0)

    def run_case(seq_len, batch, dim_emb, max_len, **kw):
        case_key = jax.random.fold_in(key, seq_len * 100000 + batch * 1000 + dim_emb)
        k_x, k_pe = jax.random.split(case_key)
        x = jax.random.normal(k_x, (seq_len, batch, dim_emb), dtype=jnp.float32)
        # nn.Parameter is initialized to zeros in the module; use non-trivial
        # values so the broadcast add is actually exercised.
        pos_enc = jax.random.normal(k_pe, (max_len, 1, dim_emb), dtype=jnp.float32)
        out = jax.block_until_ready(positional_encoding(x, pos_enc, **kw))
        ref = x + pos_enc[:seq_len]
        assert out.shape == (seq_len, batch, dim_emb)
        assert jnp.allclose(out, ref, atol=1e-6), (
            f"mismatch vs reference for shape {(seq_len, batch, dim_emb)}")

    # Module-like demo shape (3D path; D not a multiple of 128).
    run_case(16, 2, 32, 80)
    # Lane-dense slab path (B < 8, D % 128 == 0).
    run_case(16, 2, 128, 80)
    # Plain 3D path with B a multiple of 8 (fully dense tiles).
    run_case(24, 8, 256, 80)
    # Force the wide-row guard (dim_emb tiling) with a tiny tile-selection budget.
    run_case(16, 8, 256, 80, vmem_budget_bytes=32 * 1024)

    print("KERNEL_OK")
</pallas_src>

<mosaic_0001>
module attributes {stable_mosaic.version = 11 : i64} {
  func.func @_pe_add_3d_kernel(%arg0: i32, %arg1: i32, %arg2: memref<16x2x32xf32, #tpu.memory_space<vmem>>, %arg3: memref<16x1x32xf32, #tpu.memory_space<vmem>>, %arg4: memref<16x2x32xf32, #tpu.memory_space<vmem>>) attributes {dimension_semantics = [#tpu.dimension_semantics<parallel>, #tpu.dimension_semantics<parallel>], iteration_bounds = array<i64: 1, 1>, scalar_prefetch = 0 : i64, scratch_operands = 0 : i64, tpu.core_type = #tpu.core_type<tc>, window_params = [{transform_indices = @transform_0, window_bounds = array<i64: 16, 2, 32>}, {transform_indices = @transform_1, window_bounds = array<i64: 16, 1, 32>}, {transform_indices = @transform_2, window_bounds = array<i64: 16, 2, 32>}]} {
    %c0 = arith.constant 0 : index
    %c0_0 = arith.constant 0 : index
    %c0_1 = arith.constant 0 : index
    %0 = vector.load %arg2[%c0, %c0_0, %c0_1] : memref<16x2x32xf32, #tpu.memory_space<vmem>>, vector<16x2x32xf32>
    %c0_2 = arith.constant 0 : index
    %c0_3 = arith.constant 0 : index
    %c0_4 = arith.constant 0 : index
    %1 = vector.load %arg3[%c0_2, %c0_3, %c0_4] : memref<16x1x32xf32, #tpu.memory_space<vmem>>, vector<16x1x32xf32>
    %2 = vector.broadcast %1 : vector<16x1x32xf32> to vector<16x2x32xf32>
    %3 = arith.addf %0, %2 : vector<16x2x32xf32>
    %c0_5 = arith.constant 0 : index
    %c0_6 = arith.constant 0 : index
    %c0_7 = arith.constant 0 : index
    %4 = vector.load %arg4[%c0_5, %c0_6, %c0_7] : memref<16x2x32xf32, #tpu.memory_space<vmem>>, vector<16x2x32xf32>
    tpu.vector_store %arg4[%c0_5, %c0_6, %c0_7], %3 {strides = array<i32>} : memref<16x2x32xf32, #tpu.memory_space<vmem>>, vector<16x2x32xf32>,
    return
  }
  func.func @transform_0(%arg0: i32, %arg1: i32) -> (i32, i32, i32) {
    %c0_i32 = arith.constant 0 : i32
    %c0_i32_0 = arith.constant 0 : i32
    return %arg0, %c0_i32, %arg1 : i32, i32, i32
  }
  func.func @transform_1(%arg0: i32, %arg1: i32) -> (i32, i32, i32) {
    %c0_i32 = arith.constant 0 : i32
    %c0_i32_0 = arith.constant 0 : i32
    return %arg0, %c0_i32, %arg1 : i32, i32, i32
  }
  func.func @transform_2(%arg0: i32, %arg1: i32) -> (i32, i32, i32) {
    %c0_i32 = arith.constant 0 : i32
    %c0_i32_0 = arith.constant 0 : i32
    return %arg0, %c0_i32, %arg1 : i32, i32, i32
  }
}

</mosaic_0001>

<bundles_post_ra>
// kernel: tpu_custom_call.1
= control target key start
LH: loop header
LB: loop body
LE: loop exit
PB: predicated region body
PF: predicated region fallthrough
CT: control target
= control target key end

     0   :  { %vm156_vm0 = vcmask 254976   ;;  %s363_s0 = inlined_call_operand.vmem [shape: f32[16,2,32], index: 0, kind: input, shape index: {}]   ;;  %s364_s1 = inlined_call_operand.vmem [shape: f32[80,1,32], index: 1, kind: input, shape index: {}]   ;;  %s365_s2 = inlined_call_operand.hbm [shape: f32[16,2,32], index: 2, kind: output, shape index: {}]  }
   0x1   :  { %v12_v0 = vld [vmem:[%s363_s0] sm:$0x3]  ;;  %v13_v3 = vld [vmem:[%s363_s0 + $0x2] sm:$0x3]  ;;  %v14_v5 = vld [vmem:[%s363_s0 + $0x4] sm:$0x3] }
   0x2   :  { %v189_v1 = vld [vmem:[%s364_s1] ss:$0 sm:$0xff]  ;;  %v190_v4 = vld [vmem:[%s364_s1 + $0x1] ss:$0 sm:$0xff]  ;;  %v191_v7 = vld [vmem:[%s364_s1 + $0x2] ss:$0 sm:$0xff] }
   0x3   :  { %v140_v2 = vadd.f32 %v189_v1, %v12_v0  ;;  %v141_v6 = vadd.f32 %v190_v4, %v13_v3  ;;  %v15_v8 = vld [vmem:[%s363_s0 + $0x6] sm:$0x3]  ;;  %v192_v9 = vld [vmem:[%s364_s1 + $0x3] ss:$0 sm:$0xff]  ;;  %v142_v10 = vadd.f32 %v191_v7, %v14_v5  ;;  %v16_v12 = vld [vmem:[%s363_s0 + $0x8] sm:$0x3] }
   0x4   :  { %v143_v11 = vadd.f32 %v192_v9, %v15_v8  ;;  %v193_v13 = vld [vmem:[%s364_s1 + $0x4] ss:$0 sm:$0xff]  ;;  %v17_v14 = vld [vmem:[%s363_s0 + $0xa] sm:$0x3]  ;;  %v194_v16 = vld [vmem:[%s364_s1 + $0x5] ss:$0 sm:$0xff] }
   0x5   :  { %157 = vst.msk [vmem:[#allocation2] sm:$0x3] %vm156_vm0, %v140_v2  ;;  %158 = vst.msk [vmem:[#allocation2 + $0x2] sm:$0x3] %vm156_vm0, %v141_v6  ;;  %v144_v15 = vadd.f32 %v193_v13, %v16_v12  ;;  %v18_v17 = vld [vmem:[%s363_s0 + $0xc] sm:$0x3]  ;;  %v145_v19 = vadd.f32 %v194_v16, %v17_v14 }
   0x6   :  { %v195_v18 = vld [vmem:[%s364_s1 + $0x6] ss:$0 sm:$0xff]  ;;  %159 = vst.msk [vmem:[#allocation2 + $0x4] sm:$0x3] %vm156_vm0, %v142_v10  ;;  %160 = vst.msk [vmem:[#allocation2 + $0x6] sm:$0x3] %vm156_vm0, %v143_v11 }
   0x7   :  { %v146_v20 = vadd.f32 %v195_v18, %v18_v17  ;;  %v19_v21 = vld [vmem:[%s363_s0 + $0xe] sm:$0x3]  ;;  %v196_v22 = vld [vmem:[%s364_s1 + $0x7] ss:$0 sm:$0xff]  ;;  %v20_v23 = vld [vmem:[%s363_s0 + $0x10] sm:$0x3] }
   0x8   :  { %161 = vst.msk [vmem:[#allocation2 + $0x8] sm:$0x3] %vm156_vm0, %v144_v15  ;;  %v147_v24 = vadd.f32 %v196_v22, %v19_v21  ;;  %v197_v25 = vld [vmem:[%s364_s1 + $0x8] ss:$0 sm:$0xff]  ;;  %v21_v26 = vld [vmem:[%s363_s0 + $0x12] sm:$0x3] }
   0x9   :  { %v198_v27 = vld [vmem:[%s364_s1 + $0x9] ss:$0 sm:$0xff]  ;;  %162 = vst.msk [vmem:[#allocation2 + $0xa] sm:$0x3] %vm156_vm0, %v145_v19  ;;  %163 = vst.msk [vmem:[#allocation2 + $0xc] sm:$0x3] %vm156_vm0, %v146_v20  ;;  %v148_v28 = vadd.f32 %v197_v25, %v20_v23 }
   0xa   :  { %v149_v29 = vadd.f32 %v198_v27, %v21_v26  ;;  %v22_v30 = vld [vmem:[%s363_s0 + $0x14] sm:$0x3]  ;;  %v199_v31 = vld [vmem:[%s364_s1 + $0xa] ss:$0 sm:$0xff]  ;;  %v23_v32 = vld [vmem:[%s363_s0 + $0x16] sm:$0x3] }
   0xb   :  { %164 = vst.msk [vmem:[#allocation2 + $0xe] sm:$0x3] %vm156_vm0, %v147_v24  ;;  %v150_v33 = vadd.f32 %v199_v31, %v22_v30  ;;  %v200_v34 = vld [vmem:[%s364_s1 + $0xb] ss:$0 sm:$0xff]  ;;  %v24_v35 = vld [vmem:[%s363_s0 + $0x18] sm:$0x3] }
   0xc   :  { %v201_v36 = vld [vmem:[%s364_s1 + $0xc] ss:$0 sm:$0xff]  ;;  %165 = vst.msk [vmem:[#allocation2 + $0x10] sm:$0x3] %vm156_vm0, %v148_v28  ;;  %166 = vst.msk [vmem:[#allocation2 + $0x12] sm:$0x3] %vm156_vm0, %v149_v29  ;;  %v151_v37 = vadd.f32 %v200_v34, %v23_v32 }
   0xd   :  { %v152_v38 = vadd.f32 %v201_v36, %v24_v35  ;;  %v25_v39 = vld [vmem:[%s363_s0 + $0x1a] sm:$0x3]  ;;  %v202_v40 = vld [vmem:[%s364_s1 + $0xd] ss:$0 sm:$0xff]  ;;  %v26_v41 = vld [vmem:[%s363_s0 + $0x1c] sm:$0x3] }
   0xe   :  { %167 = vst.msk [vmem:[#allocation2 + $0x14] sm:$0x3] %vm156_vm0, %v150_v33  ;;  %v153_v42 = vadd.f32 %v202_v40, %v25_v39  ;;  %v203_v43 = vld [vmem:[%s364_s1 + $0xe] ss:$0 sm:$0xff]  ;;  %v27_v44 = vld [vmem:[%s363_s0 + $0x1e] sm:$0x3] }
   0xf   :  { %v204_v45 = vld [vmem:[%s364_s1 + $0xf] ss:$0 sm:$0xff]  ;;  %168 = vst.msk [vmem:[#allocation2 + $0x16] sm:$0x3] %vm156_vm0, %v151_v37  ;;  %169 = vst.msk [vmem:[#allocation2 + $0x18] sm:$0x3] %vm156_vm0, %v152_v38  ;;  %v154_v46 = vadd.f32 %v203_v43, %v26_v41 }
  0x10   :  { %v155_v47 = vadd.f32 %v204_v45, %v27_v44 }
  0x11   :  { %7 = vsyncpa [#allocation3], 0  ;;  %s230_s17 = smov [#allocation2]   ;;  %170 = vst.msk [vmem:[#allocation2 + $0x1a] sm:$0x3] %vm156_vm0, %v153_v42 }
  0x12   :  { %s178_s18 = sshll.u32 %s230_s17, 4  ;;  %171 = vst.msk [vmem:[#allocation2 + $0x1c] sm:$0x3] %vm156_vm0, %v154_v46  ;;  %172 = vst.msk [vmem:[#allocation2 + $0x1e] sm:$0x3] %vm156_vm0, %v155_v47  ;;  %s179_s18 = int_to_ptr.vmem [resolvable:$true] %s178_s18 }
  0x13   :  { %s208_s0 = scalar_lea.vmem %s179_s18, 512  ;;  %p213_p1 = scmp.lt.s32.totalorder %s179_s18, %s179_s18 }
  0x14   :  { %p209_p0 = scmp.ne.s32.totalorder %s179_s18, %s208_s0  ;;  %p214_p2 = scmp.lt.s32.totalorder %s208_s0, %s208_s0 }
  0x16   :  { %p215_p3 = por %p214_p2, %p213_p1 }
  0x18   :  { %p216_p4 = pnand %p215_p3, %p209_p0 }
  0x1a   :  { %219 = shalt.err (!%p216_p4)
}
  0x1b   :  { %s231_s1 = smov 32   ;;  %s232_s19 = smov 2  }
  0x1c   :  { %184 = dma.vmem_to_hbm [thread:$0]  %s179_s18, 512, %s365_s2, [#allocation3], %s231_s1, %s231_s1, %s232_s19  }
  0x1d   :  { %228 = dma.done.wait [#allocation3], 512  }
  0x1e   :  { %229 = vsyncadd [#allocation3], 4294966784 }
  0x1f   :  { %188 = vsyncpa [#allocation3], 1 }

</bundles_post_ra>
